<compile_context>
chip_gen: v7x
topology: tpu7x:2x2x1
jax: 0.10.0
libtpu: 0.0.40
codegen_flags: <defaults>
</compile_context>

<pallas_src>
import jax
import jax.numpy as jnp
from jax.experimental import pallas as pl
from jax.experimental.pallas import tpu as pltpu

INPUT_DIM = 32   # sum of concatenated feature dims in the demo
H1, H2, H3 = 256, 128, 128
OUT_DIM = 7


def _round_up(x, m):
    return ((x + m - 1) // m) * m


def _cdiv(a, b):
    return (a + b - 1) // b


def _num_tensorcores():
    """Best-effort TensorCore-per-chip count (v7x has 2, v5e/v6e have 1)."""
    try:
        info = pltpu.get_tpu_info()
        for name in ("num_cores", "core_count", "num_tensorcores",
                     "tensorcore_count", "cores_per_chip", "num_cores_per_chip"):
            v = getattr(info, name, None)
            if isinstance(v, int) and v >= 1:
                return v
    except Exception:
        pass
    try:
        v = getattr(jax.local_devices()[0], "num_cores", None)
        if isinstance(v, int) and v >= 1:
            return v
    except Exception:
        pass
    return 1


def _make_mlp_kernel(n_streams):
    """Kernel factory: the concat of `n_streams` feature tensors is fused in
    as a K-split of the first matmul (no (M, D) slab ever hits HBM)."""

    def kernel(*refs):
        feat_refs = refs[:n_streams]
        w1_refs = refs[n_streams:2 * n_streams]
        (b1_ref, w2_ref, b2_ref, w3_ref, b3_ref, w4_ref, b4_ref,
         o_ref) = refs[2 * n_streams:]
        cdt = w2_ref.dtype  # compute dtype of layers 2..4 (f32 or bf16)

        # Layer 1 (fused concat, kept fully f32 for accuracy):
        #   h = sum_k feat_k @ w1_k + b1 ; ReLU
        h = jnp.dot(feat_refs[0][...], w1_refs[0][...],
                    preferred_element_type=jnp.float32)
        for k in range(1, n_streams):
            h = h + jnp.dot(feat_refs[k][...], w1_refs[k][...],
                            preferred_element_type=jnp.float32)
        h = jnp.maximum(h + b1_ref[...], 0.0).astype(cdt)

        # Layer 2: (tm, 256) @ (256, 128) + b2 ; ReLU
        h = jnp.dot(h, w2_ref[...], preferred_element_type=jnp.float32)
        h = jnp.maximum(h + b2_ref[...], 0.0).astype(cdt)

        # Layer 3: (tm, 128) @ (128, 128) + b3 ; ReLU
        h = jnp.dot(h, w3_ref[...], preferred_element_type=jnp.float32)
        h = jnp.maximum(h + b3_ref[...], 0.0).astype(cdt)

        # Layer 4: (tm, 128) @ (128, out_pad) + b4  (columns >= 7 are zero)
        out = jnp.dot(h, w4_ref[...], preferred_element_type=jnp.float32)
        o_ref[...] = (out + b4_ref[...]).astype(o_ref.dtype)

    return kernel


def prepare_params(params, feat_dims, compute_dtype=jnp.bfloat16, out_pad=128):
    """One-time parameter prep (hoisted off the per-call hot path).

    params: (w1,b1,w2,b2,w3,b3,w4,b4), weights stored as (in, out).
    feat_dims: per-stream feature widths (sum == w1.shape[0]); w1 is split
      along its input axis so the concat can be fused into the kernel.
    compute_dtype: dtype of the layer-2..4 matmul operands (bf16 recommended
      on v6e/v7x); layer 1 and all bias adds stay f32.
    out_pad: output lane width (128 = lane-dense store; 8 = minimal writeback).
    """
    w1, b1, w2, b2, w3, b3, w4, b4 = params
    feat_dims = tuple(int(d) for d in feat_dims)
    assert sum(feat_dims) == w1.shape[0], "feat_dims must sum to input_dim"

    w1_parts, off = [], 0
    for d in feat_dims:
        w1_parts.append(w1[off:off + d, :].astype(jnp.float32))  # layer 1 stays f32
        off += d

    out_pad = max(int(out_pad), OUT_DIM)
    w4p = jnp.zeros((w4.shape[0], out_pad), jnp.float32).at[:, :OUT_DIM].set(w4)
    b4p = jnp.zeros((out_pad,), jnp.float32).at[:OUT_DIM].set(b4)

    return dict(
        feat_dims=feat_dims,
        out_pad=out_pad,
        compute_dtype=jnp.dtype(compute_dtype),
        w1_parts=tuple(w1_parts),
        b1=b1.reshape(1, -1).astype(jnp.float32),
        w2=w2.astype(compute_dtype), b2=b2.reshape(1, -1).astype(jnp.float32),
        w3=w3.astype(compute_dtype), b3=b3.reshape(1, -1).astype(jnp.float32),
        w4=w4p.astype(compute_dtype), b4=b4p.reshape(1, -1).astype(jnp.float32),
    )


def per_part_decoder_pallas(feat_list, prepared, base=None, *, tile_m=1024):
    """feat_list: list of (B, P, Dk) arrays; prepared: prepare_params() output;
    base: optional (B, P, 7). Returns (B, P, 7) float32."""
    feat_dims = tuple(int(f.shape[-1]) for f in feat_list)
    assert feat_dims == prepared["feat_dims"], "feat dims differ from prepared split"
    B, P = int(feat_list[0].shape[0]), int(feat_list[0].shape[1])
    M = B * P
    D = sum(feat_dims)
    out_pad = prepared["out_pad"]
    out_dtype = prepared["compute_dtype"]       # bf16 output in the bf16 mode
    out_itemsize = jnp.dtype(out_dtype).itemsize

    # Feature streams stay f32 and are only reshaped (no concat/astype/pad pass).
    feats2 = [f.reshape(M, d).astype(jnp.float32) for f, d in zip(feat_list, feat_dims)]

    # --- row-tile selection --------------------------------------------------
    sub = 16 if out_dtype == jnp.dtype(jnp.bfloat16) else 8
    tm = min(_round_up(max(int(tile_m), sub), sub), _round_up(M, sub))
    if tm >= M:
        tm = M                      # single full-height block (always layout-legal)
    n_steps = _cdiv(M, tm)
    # v7x: the "parallel" row axis is the only way to feed both TensorCores;
    # split a single-step grid in two there. Skipped on 1-TC v5e/v6e.
    if n_steps == 1 and M >= 2 * sub and _num_tensorcores() >= 2:
        tm = _round_up(_cdiv(M, 2), sub)
        n_steps = _cdiv(M, tm)
    grid = (n_steps,)

    rep = lambda i: (0, 0)          # weights/biases resident across the row grid
    in_specs = (
        [pl.BlockSpec((tm, d), lambda i: (i, 0)) for d in feat_dims]          # feats
        + [pl.BlockSpec((d, H1), rep) for d in feat_dims]                     # w1 parts
        + [pl.BlockSpec((1, H1), rep),                                        # b1
           pl.BlockSpec((H1, H2), rep), pl.BlockSpec((1, H2), rep),           # w2, b2
           pl.BlockSpec((H2, H3), rep), pl.BlockSpec((1, H3), rep),           # w3, b3
           pl.BlockSpec((H3, out_pad), rep), pl.BlockSpec((1, out_pad), rep)] # w4, b4
    )

    param_arrays = list(prepared["w1_parts"]) + [
        prepared["b1"], prepared["w2"], prepared["b2"], prepared["w3"],
        prepared["b3"], prepared["w4"], prepared["b4"]]
    weight_bytes = int(sum(a.size * a.dtype.itemsize for a in param_arrays))

    # Advisory cost estimate for XLA's scheduler around the custom call.
    flops = 2 * M * (D * H1 + H1 * H2 + H2 * H3 + H3 * OUT_DIM)
    bytes_accessed = M * D * 4 + weight_bytes + M * out_pad * out_itemsize
    cost = pl.CostEstimate(flops=int(flops), transcendentals=0,
                           bytes_accessed=int(bytes_accessed))

    # Bump the scoped-VMEM limit only when a very large tile would approach
    # v5e's 16 MiB default (v6e/v7x defaults are larger; capped at 64 MiB).
    vmem_est = (2 * tm * (D * 4 + out_pad * out_itemsize)
                + 2 * tm * H1 * 4 + 2 * weight_bytes)
    vmem_limit = None
    if vmem_est > (12 << 20):
        vmem_limit = int(min(max(2 * vmem_est, 32 << 20), 64 << 20))

    out_padded = pl.pallas_call(
        _make_mlp_kernel(len(feat_list)),
        out_shape=jax.ShapeDtypeStruct((M, out_pad), out_dtype),
        grid_spec=pltpu.PrefetchScalarGridSpec(
            num_scalar_prefetch=0,
            grid=grid,
            in_specs=in_specs,
            out_specs=pl.BlockSpec((tm, out_pad), lambda i: (i, 0)),
        ),
        compiler_params=pltpu.CompilerParams(
            dimension_semantics=("parallel",),
            vmem_limit_bytes=vmem_limit),
        cost_estimate=cost,
    )(*feats2, *prepared["w1_parts"],
      prepared["b1"], prepared["w2"], prepared["b2"],
      prepared["w3"], prepared["b3"], prepared["w4"], prepared["b4"])

    out = out_padded[:, :OUT_DIM].astype(jnp.float32).reshape(B, P, OUT_DIM)
    if base is not None:
        # Residual added on the narrow (B, P, 7) result in f32.
        out = out + base.astype(jnp.float32)
    return out


def _init_params(key):
    """Deterministic init matching the PyTorch layer shapes (weights stored
    as (in, out), i.e. transposed vs torch's (out, in))."""
    shapes = [(INPUT_DIM, H1), (H1, H2), (H2, H3), (H3, OUT_DIM)]
    params = []
    for i, (fan_in, fan_out) in enumerate(shapes):
        kw, kb = jax.random.split(jax.random.fold_in(key, i))
        bound = 1.0 / jnp.sqrt(fan_in)
        w = jax.random.uniform(kw, (fan_in, fan_out), jnp.float32, -bound, bound)
        b = jax.random.uniform(kb, (fan_out,), jnp.float32, -bound, bound)
        params += [w, b]
    return tuple(params)


def _reference(feat_list, params, base=None):
    x = jnp.concatenate(feat_list, axis=2)
    w1, b1, w2, b2, w3, b3, w4, b4 = params
    h = jnp.maximum(x @ w1 + b1, 0.0)
    h = jnp.maximum(h @ w2 + b2, 0.0)
    h = jnp.maximum(h @ w3 + b3, 0.0)
    out = h @ w4 + b4
    if base is not None:
        out = out + base
    return out


if __name__ == "__main__":
    key = jax.random.PRNGKey(0)
    k_f1, k_f2, k_base, k_params = jax.random.split(key, 4)

    B, P = 2, 8
    # Two feature streams concatenated along dim 2: 16 + 16 = 32 = input_dim
    feat1 = jax.random.normal(k_f1, (B, P, 16), jnp.float32)
    feat2 = jax.random.normal(k_f2, (B, P, 16), jnp.float32)
    base = jax.random.normal(k_base, (B, P, OUT_DIM), jnp.float32)
    feat_dims = (16, 16)

    params = _init_params(k_params)
    ref = _reference([feat1, feat2], params, base=base)
    ref_nobase = _reference([feat1, feat2], params, base=None)

    # --- f32 compute path (lane-dense out_pad=128) ---------------------------
    # Tolerance accounts for TPU default-precision f32 matmul (bf16-pass based)
    # differing in accumulation scheme between the kernel and the XLA reference.
    prep_f32 = prepare_params(params, feat_dims, compute_dtype=jnp.float32,
                              out_pad=128)
    out = jax.block_until_ready(
        per_part_decoder_pallas([feat1, feat2], prep_f32, base=base))
    assert out.shape == (B, P, OUT_DIM)
    assert jnp.allclose(out, ref, atol=2e-2, rtol=2e-2), "f32 mismatch vs reference"

    out_nobase = jax.block_until_ready(
        per_part_decoder_pallas([feat1, feat2], prep_f32, base=None))
    assert jnp.allclose(out_nobase, ref_nobase, atol=2e-2, rtol=2e-2)

    # --- bf16 matmul path, lane-dense bf16 output (recommended default) ------
    prep_bf16 = prepare_params(params, feat_dims, compute_dtype=jnp.bfloat16,
                               out_pad=128)
    out_bf16 = jax.block_until_ready(
        per_part_decoder_pallas([feat1, feat2], prep_bf16, base=base))
    assert out_bf16.shape == (B, P, OUT_DIM)
    assert jnp.allclose(out_bf16, ref, atol=1e-1, rtol=1e-1), "bf16 mismatch"

    # --- bf16 matmul path, narrow out_pad=8 (large-M writeback sweep) --------
    prep_bf16_narrow = prepare_params(params, feat_dims,
                                      compute_dtype=jnp.bfloat16, out_pad=8)
    out_narrow = jax.block_until_ready(
        per_part_decoder_pallas([feat1, feat2], prep_bf16_narrow, base=base))
    assert out_narrow.shape == (B, P, OUT_DIM)
    assert jnp.allclose(out_narrow, ref, atol=1e-1, rtol=1e-1), "narrow-out mismatch"

    print("KERNEL_OK")
</pallas_src>

<mosaic_0001>
module attributes {stable_mosaic.version = 11 : i64} {
  func.func @kernel(%arg0: i32, %arg1: memref<16x16xf32, #tpu.memory_space<vmem>>, %arg2: memref<16x16xf32, #tpu.memory_space<vmem>>, %arg3: memref<16x256xf32, #tpu.memory_space<vmem>>, %arg4: memref<16x256xf32, #tpu.memory_space<vmem>>, %arg5: memref<1x256xf32, #tpu.memory_space<vmem>>, %arg6: memref<256x128xf32, #tpu.memory_space<vmem>>, %arg7: memref<1x128xf32, #tpu.memory_space<vmem>>, %arg8: memref<128x128xf32, #tpu.memory_space<vmem>>, %arg9: memref<1x128xf32, #tpu.memory_space<vmem>>, %arg10: memref<128x128xf32, #tpu.memory_space<vmem>>, %arg11: memref<1x128xf32, #tpu.memory_space<vmem>>, %arg12: memref<16x128xf32, #tpu.memory_space<vmem>>) attributes {dimension_semantics = [#tpu.dimension_semantics<parallel>], iteration_bounds = array<i64: 1>, scalar_prefetch = 0 : i64, scratch_operands = 0 : i64, tpu.core_type = #tpu.core_type<tc>, window_params = [{transform_indices = @transform_0, window_bounds = array<i64: 16, 16>}, {transform_indices = @transform_1, window_bounds = array<i64: 16, 16>}, {pipeline_mode = #tpu.pipeline_mode<synchronous>, transform_indices = @transform_2, window_bounds = array<i64: 16, 256>}, {pipeline_mode = #tpu.pipeline_mode<synchronous>, transform_indices = @transform_3, window_bounds = array<i64: 16, 256>}, {pipeline_mode = #tpu.pipeline_mode<synchronous>, transform_indices = @transform_4, window_bounds = array<i64: 1, 256>}, {pipeline_mode = #tpu.pipeline_mode<synchronous>, transform_indices = @transform_5, window_bounds = array<i64: 256, 128>}, {pipeline_mode = #tpu.pipeline_mode<synchronous>, transform_indices = @transform_6, window_bounds = array<i64: 1, 128>}, {pipeline_mode = #tpu.pipeline_mode<synchronous>, transform_indices = @transform_7, window_bounds = array<i64: 128, 128>}, {pipeline_mode = #tpu.pipeline_mode<synchronous>, transform_indices = @transform_8, window_bounds = array<i64: 1, 128>}, {pipeline_mode = #tpu.pipeline_mode<synchronous>, transform_indices = @transform_9, window_bounds = array<i64: 128, 128>}, {pipeline_mode = #tpu.pipeline_mode<synchronous>, transform_indices = @transform_10, window_bounds = array<i64: 1, 128>}, {transform_indices = @transform_11, window_bounds = array<i64: 16, 128>}]} {
    %c0 = arith.constant 0 : index
    %c0_0 = arith.constant 0 : index
    %0 = vector.load %arg1[%c0, %c0_0] : memref<16x16xf32, #tpu.memory_space<vmem>>, vector<16x16xf32>
    %c0_1 = arith.constant 0 : index
    %c0_2 = arith.constant 0 : index
    %1 = vector.load %arg3[%c0_1, %c0_2] : memref<16x256xf32, #tpu.memory_space<vmem>>, vector<16x256xf32>
    %cst = arith.constant dense<0.000000e+00> : vector<16x256xf32>
    %2 = tpu.matmul %0, %1, %cst {dimension_numbers = #tpu.dot_dimension_numbers<[1], [0], [0], [1], [0, 0, 1, 1], [], []>} : vector<16x16xf32>, vector<16x256xf32>, vector<16x256xf32> -> vector<16x256xf32>
    %c0_3 = arith.constant 0 : index
    %c0_4 = arith.constant 0 : index
    %3 = vector.load %arg2[%c0_3, %c0_4] : memref<16x16xf32, #tpu.memory_space<vmem>>, vector<16x16xf32>
    %c0_5 = arith.constant 0 : index
    %c0_6 = arith.constant 0 : index
    %4 = vector.load %arg4[%c0_5, %c0_6] : memref<16x256xf32, #tpu.memory_space<vmem>>, vector<16x256xf32>
    %cst_7 = arith.constant dense<0.000000e+00> : vector<16x256xf32>
    %5 = tpu.matmul %3, %4, %cst_7 {dimension_numbers = #tpu.dot_dimension_numbers<[1], [0], [0], [1], [0, 0, 1, 1], [], []>} : vector<16x16xf32>, vector<16x256xf32>, vector<16x256xf32> -> vector<16x256xf32>
    %6 = arith.addf %2, %5 : vector<16x256xf32>
    %c0_8 = arith.constant 0 : index
    %c0_9 = arith.constant 0 : index
    %7 = vector.load %arg5[%c0_8, %c0_9] : memref<1x256xf32, #tpu.memory_space<vmem>>, vector<1x256xf32>
    %8 = vector.broadcast %7 : vector<1x256xf32> to vector<16x256xf32>
    %9 = arith.addf %6, %8 : vector<16x256xf32>
    %cst_10 = arith.constant 0.000000e+00 : f32
    %10 = vector.broadcast %cst_10 : f32 to vector<16x256xf32>
    %11 = arith.maximumf %9, %10 : vector<16x256xf32>
    %c0_11 = arith.constant 0 : index
    %c0_12 = arith.constant 0 : index
    %12 = vector.load %arg6[%c0_11, %c0_12] : memref<256x128xf32, #tpu.memory_space<vmem>>, vector<256x128xf32>
    %cst_13 = arith.constant dense<0.000000e+00> : vector<16x128xf32>
    %13 = tpu.matmul %11, %12, %cst_13 {dimension_numbers = #tpu.dot_dimension_numbers<[1], [0], [0], [1], [0, 0, 1, 1], [], []>} : vector<16x256xf32>, vector<256x128xf32>, vector<16x128xf32> -> vector<16x128xf32>
    %c0_14 = arith.constant 0 : index
    %c0_15 = arith.constant 0 : index
    %14 = vector.load %arg7[%c0_14, %c0_15] : memref<1x128xf32, #tpu.memory_space<vmem>>, vector<1x128xf32>
    %15 = vector.broadcast %14 : vector<1x128xf32> to vector<16x128xf32>
    %16 = arith.addf %13, %15 : vector<16x128xf32>
    %cst_16 = arith.constant 0.000000e+00 : f32
    %17 = vector.broadcast %cst_16 : f32 to vector<16x128xf32>
    %18 = arith.maximumf %16, %17 : vector<16x128xf32>
    %c0_17 = arith.constant 0 : index
    %c0_18 = arith.constant 0 : index
    %19 = vector.load %arg8[%c0_17, %c0_18] : memref<128x128xf32, #tpu.memory_space<vmem>>, vector<128x128xf32>
    %cst_19 = arith.constant dense<0.000000e+00> : vector<16x128xf32>
    %20 = tpu.matmul %18, %19, %cst_19 {dimension_numbers = #tpu.dot_dimension_numbers<[1], [0], [0], [1], [0, 0, 1, 1], [], []>} : vector<16x128xf32>, vector<128x128xf32>, vector<16x128xf32> -> vector<16x128xf32>
    %c0_20 = arith.constant 0 : index
    %c0_21 = arith.constant 0 : index
    %21 = vector.load %arg9[%c0_20, %c0_21] : memref<1x128xf32, #tpu.memory_space<vmem>>, vector<1x128xf32>
    %22 = vector.broadcast %21 : vector<1x128xf32> to vector<16x128xf32>
    %23 = arith.addf %20, %22 : vector<16x128xf32>
    %cst_22 = arith.constant 0.000000e+00 : f32
    %24 = vector.broadcast %cst_22 : f32 to vector<16x128xf32>
    %25 = arith.maximumf %23, %24 : vector<16x128xf32>
    %c0_23 = arith.constant 0 : index
    %c0_24 = arith.constant 0 : index
    %26 = vector.load %arg10[%c0_23, %c0_24] : memref<128x128xf32, #tpu.memory_space<vmem>>, vector<128x128xf32>
    %cst_25 = arith.constant dense<0.000000e+00> : vector<16x128xf32>
    %27 = tpu.matmul %25, %26, %cst_25 {dimension_numbers = #tpu.dot_dimension_numbers<[1], [0], [0], [1], [0, 0, 1, 1], [], []>} : vector<16x128xf32>, vector<128x128xf32>, vector<16x128xf32> -> vector<16x128xf32>
    %c0_26 = arith.constant 0 : index
    %c0_27 = arith.constant 0 : index
    %28 = vector.load %arg11[%c0_26, %c0_27] : memref<1x128xf32, #tpu.memory_space<vmem>>, vector<1x128xf32>
    %29 = vector.broadcast %28 : vector<1x128xf32> to vector<16x128xf32>
    %30 = arith.addf %27, %29 : vector<16x128xf32>
    %c0_28 = arith.constant 0 : index
    %c0_29 = arith.constant 0 : index
    %31 = vector.load %arg12[%c0_28, %c0_29] : memref<16x128xf32, #tpu.memory_space<vmem>>, vector<16x128xf32>
    tpu.vector_store %arg12[%c0_28, %c0_29], %30 {strides = array<i32>} : memref<16x128xf32, #tpu.memory_space<vmem>>, vector<16x128xf32>,
    return
  }
  func.func @transform_0(%arg0: i32) -> (i32, i32) {
    %c0_i32 = arith.constant 0 : i32
    %c0_i32_0 = arith.constant 0 : i32
    return %arg0, %c0_i32 : i32, i32
  }
  func.func @transform_1(%arg0: i32) -> (i32, i32) {
    %c0_i32 = arith.constant 0 : i32
    %c0_i32_0 = arith.constant 0 : i32
    return %arg0, %c0_i32 : i32, i32
  }
  func.func @transform_2(%arg0: i32) -> (i32, i32) {
    %c0_i32 = arith.constant 0 : i32
    %c0_i32_0 = arith.constant 0 : i32
    %c0_i32_1 = arith.constant 0 : i32
    return %c0_i32, %c0_i32_0 : i32, i32
  }
  func.func @transform_3(%arg0: i32) -> (i32, i32) {
    %c0_i32 = arith.constant 0 : i32
    %c0_i32_0 = arith.constant 0 : i32
    %c0_i32_1 = arith.constant 0 : i32
    return %c0_i32, %c0_i32_0 : i32, i32
  }
  func.func @transform_4(%arg0: i32) -> (i32, i32) {
    %c0_i32 = arith.constant 0 : i32
    %c0_i32_0 = arith.constant 0 : i32
    %c0_i32_1 = arith.constant 0 : i32
    return %c0_i32, %c0_i32_0 : i32, i32
  }
  func.func @transform_5(%arg0: i32) -> (i32, i32) {
    %c0_i32 = arith.constant 0 : i32
    %c0_i32_0 = arith.constant 0 : i32
    %c0_i32_1 = arith.constant 0 : i32
    return %c0_i32, %c0_i32_0 : i32, i32
  }
  func.func @transform_6(%arg0: i32) -> (i32, i32) {
    %c0_i32 = arith.constant 0 : i32
    %c0_i32_0 = arith.constant 0 : i32
    %c0_i32_1 = arith.constant 0 : i32
    return %c0_i32, %c0_i32_0 : i32, i32
  }
  func.func @transform_7(%arg0: i32) -> (i32, i32) {
    %c0_i32 = arith.constant 0 : i32
    %c0_i32_0 = arith.constant 0 : i32
    %c0_i32_1 = arith.constant 0 : i32
    return %c0_i32, %c0_i32_0 : i32, i32
  }
  func.func @transform_8(%arg0: i32) -> (i32, i32) {
    %c0_i32 = arith.constant 0 : i32
    %c0_i32_0 = arith.constant 0 : i32
    %c0_i32_1 = arith.constant 0 : i32
    return %c0_i32, %c0_i32_0 : i32, i32
  }
  func.func @transform_9(%arg0: i32) -> (i32, i32) {
    %c0_i32 = arith.constant 0 : i32
    %c0_i32_0 = arith.constant 0 : i32
    %c0_i32_1 = arith.constant 0 : i32
    return %c0_i32, %c0_i32_0 : i32, i32
  }
  func.func @transform_10(%arg0: i32) -> (i32, i32) {
    %c0_i32 = arith.constant 0 : i32
    %c0_i32_0 = arith.constant 0 : i32
    %c0_i32_1 = arith.constant 0 : i32
    return %c0_i32, %c0_i32_0 : i32, i32
  }
  func.func @transform_11(%arg0: i32) -> (i32, i32) {
    %c0_i32 = arith.constant 0 : i32
    %c0_i32_0 = arith.constant 0 : i32
    return %arg0, %c0_i32 : i32, i32
  }
}

</mosaic_0001>

<bundles_post_ra>
// kernel: tpu_custom_call.1
= control target key start
LH: loop header
LB: loop body
LE: loop exit
PB: predicated region body
PF: predicated region fallthrough
CT: control target
= control target key end

     0   :  { %16 = vsyncpa [#allocation3], 0  ;;  %s1336_s0 = inlined_call_operand.hbm [shape: f32[16,16], index: 0, kind: input, shape index: {}]   ;;  %s1337_s1 = inlined_call_operand.hbm [shape: f32[16,16], index: 1, kind: input, shape index: {}]   ;;  %s1338_s2 = inlined_call_operand.hbm [shape: f32[16,256], index: 2, kind: input, shape index: {}]   ;;  %s1339_s3 = inlined_call_operand.hbm [shape: f32[16,256], index: 3, kind: input, shape index: {}]   ;;  %s1340_s4 = inlined_call_operand.vmem [shape: f32[1,256], index: 4, kind: input, shape index: {}]   ;;  %s1341_s5 = inlined_call_operand.hbm [shape: f32[256,128], index: 5, kind: input, shape index: {}]   ;;  %s1342_s6 = inlined_call_operand.vmem [shape: f32[1,128], index: 6, kind: input, shape index: {}]   ;;  %s1343_s7 = inlined_call_operand.hbm [shape: f32[128,128], index: 7, kind: input, shape index: {}]   ;;  %s1344_s8 = inlined_call_operand.vmem [shape: f32[1,128], index: 8, kind: input, shape index: {}]   ;;  %s1345_s9 = inlined_call_operand.hbm [shape: f32[128,128], index: 9, kind: input, shape index: {}]   ;;  %s1346_s10 = inlined_call_operand.vmem [shape: f32[1,128], index: 10, kind: input, shape index: {}]   ;;  %s1347_s11 = inlined_call_operand.hbm [shape: f32[16,128], index: 11, kind: output, shape index: {}]  }
   0x1   :  { %17 = vsyncpa [#allocation6], 0 }
   0x2   :  { %18 = vsyncpa [#allocation9], 0 }
   0x3   :  { %19 = vsyncpa [#allocation12], 0 }
   0x4   :  { %20 = vsyncpa [#allocation4], 0  ;;  %s1127_s17 = smov [#allocation5]   ;;  %s941_s21 = scalar_lea.hbm %s1337_s1, 256 }
   0x5   :  { %s38_s18 = sshll.u32 %s1127_s17, 4  ;;  %p942_p0 = scmp.ne.s32.totalorder %s1337_s1, %s941_s21  ;;  %s39_s18 = int_to_ptr.vmem [resolvable:$true] %s38_s18 }
   0x6   :  { %p945_p1 = scmp.lt.u32.totalorder %s941_s21, %s1337_s1 }
   0x8   :  { %p947_p2 = pnand %p945_p1, %p942_p0 }
   0xa   :  { %950 = shalt.err (!%p947_p2)
}
   0xb   :  { %s951_s26 = scalar_lea.vmem %s39_s18, 256  ;;  %p956_p4 = scmp.lt.s32.totalorder %s39_s18, %s39_s18 }
   0xc   :  { %p952_p3 = scmp.ne.s32.totalorder %s39_s18, %s951_s26  ;;  %p957_p5 = scmp.lt.s32.totalorder %s951_s26, %s951_s26 }
   0xe   :  { %p958_p6 = por %p957_p5, %p956_p4 }
  0x10   :  { %p959_p7 = pnand %p958_p6, %p952_p3 }
  0x12   :  { %962 = shalt.err (!%p959_p7)
}
  0x13   :  { %s1128_s27 = smov 128   ;;  %s1129_s28 = smov 8  }
  0x14   :  { %44 = dma.hbm_to_vmem [thread:$0]  %s1337_s1, 256, %s39_s18, [#allocation6], %s1128_s27, %s1128_s27, %s1129_s28  }
  0x15   :  { %s1130_s12 = smov [#allocation8]   ;;  %s1131_s14 = smov [#allocation11]  }
  0x16   :  { %s62_s13 = sshll.u32 %s1130_s12, 4  ;;  %s90_s15 = sshll.u32 %s1131_s14, 4  ;;  %s63_s13 = int_to_ptr.vmem [resolvable:$true] %s62_s13  ;;  %s91_s15 = int_to_ptr.vmem [resolvable:$true] %s90_s15 }
  0x17   :  { %s963_s19 = scalar_lea.hbm %s1339_s3, 512 }
  0x18   :  { %p964_p8 = scmp.ne.s32.totalorder %s1339_s3, %s963_s19  ;;  %p967_p9 = scmp.lt.u32.totalorder %s963_s19, %s1339_s3 }
  0x1a   :  { %p969_p10 = pnand %p967_p9, %p964_p8 }
  0x1c   :  { %972 = shalt.err (!%p969_p10)
}
  0x1d   :  { %s973_s1 = scalar_lea.vmem %s63_s13, 512  ;;  %p978_p12 = scmp.lt.s32.totalorder %s63_s13, %s63_s13 }
  0x1e   :  { %p974_p11 = scmp.ne.s32.totalorder %s63_s13, %s973_s1  ;;  %p979_p13 = scmp.lt.s32.totalorder %s973_s1, %s973_s1 }
  0x20   :  { %p980_p0 = por %p979_p13, %p978_p12 }
  0x22   :  { %p981_p1 = pnand %p980_p0, %p974_p11 }
  0x24   :  { %984 = shalt.err (!%p981_p1)
}
  0x25   :  { %s1132_s18 = smov 256   ;;  %s1133_s24 = smov 16  }
  0x26   :  { %68 = dma.hbm_to_vmem [thread:$0]  %s1339_s3, 512, %s63_s13, [#allocation9], %s1132_s18, %s1132_s18, %s1133_s24  }
  0x27   :  { %s985_s12 = scalar_lea.hbm %s1343_s7, 2048 }
  0x28   :  { %p986_p2 = scmp.ne.s32.totalorder %s1343_s7, %s985_s12  ;;  %p989_p3 = scmp.lt.u32.totalorder %s985_s12, %s1343_s7 }
  0x2a   :  { %p991_p4 = pnand %p989_p3, %p986_p2 }
  0x2c   :  { %994 = shalt.err (!%p991_p4)
}
  0x2d   :  { %s995_s20 = scalar_lea.vmem %s91_s15, 2048  ;;  %p1000_p6 = scmp.lt.s32.totalorder %s91_s15, %s91_s15 }
  0x2e   :  { %p996_p5 = scmp.ne.s32.totalorder %s91_s15, %s995_s20  ;;  %p1001_p7 = scmp.lt.s32.totalorder %s995_s20, %s995_s20 }
  0x30   :  { %p1002_p8 = por %p1001_p7, %p1000_p6 }
  0x32   :  { %p1003_p9 = pnand %p1002_p8, %p996_p5 }
  0x34   :  { %1006 = shalt.err (!%p1003_p9)
}
  0x35   :  { %96 = dma.hbm_to_vmem [thread:$0]  %s1343_s7, 2048, %s91_s15, [#allocation12], %s1128_s27, %s1128_s27, %s1129_s28  }
  0x36   :  { %s1134_s21 = smov [#allocation2]   ;;  %s1135_s23 = smov [#allocation7]  }
  0x37   :  { %s26_s22 = sshll.u32 %s1134_s21, 4  ;;  %s50_s1 = sshll.u32 %s1135_s23, 4  ;;  %s27_s22 = int_to_ptr.vmem [resolvable:$true] %s26_s22  ;;  %s51_s1 = int_to_ptr.vmem [resolvable:$true] %s50_s1 }
  0x38   :  { %s1007_s29 = scalar_lea.hbm %s1336_s0, 256 }
  0x39   :  { %p1008_p10 = scmp.ne.s32.totalorder %s1336_s0, %s1007_s29  ;;  %p1011_p11 = scmp.lt.u32.totalorder %s1007_s29, %s1336_s0 }
  0x3b   :  { %p1013_p12 = pnand %p1011_p11, %p1008_p10 }
  0x3d   :  { %1016 = shalt.err (!%p1013_p12)
}
  0x3e   :  { %s1017_s7 = scalar_lea.vmem %s27_s22, 256  ;;  %p1022_p0 = scmp.lt.s32.totalorder %s27_s22, %s27_s22 }
  0x3f   :  { %p1018_p13 = scmp.ne.s32.totalorder %s27_s22, %s1017_s7  ;;  %p1023_p1 = scmp.lt.s32.totalorder %s1017_s7, %s1017_s7 }
  0x41   :  { %p1024_p2 = por %p1023_p1, %p1022_p0 }
  0x43   :  { %p1025_p3 = pnand %p1024_p2, %p1018_p13 }
  0x45   :  { %1028 = shalt.err (!%p1025_p3)
}
  0x46   :  { %32 = dma.hbm_to_vmem [thread:$0]  %s1336_s0, 256, %s27_s22, [#allocation3], %s1128_s27, %s1128_s27, %s1129_s28  }
  0x47   :  { %s1029_s3 = scalar_lea.hbm %s1338_s2, 512 }
  0x48   :  { %p1030_p4 = scmp.ne.s32.totalorder %s1338_s2, %s1029_s3  ;;  %p1033_p5 = scmp.lt.u32.totalorder %s1029_s3, %s1338_s2 }
  0x4a   :  { %p1035_p6 = pnand %p1033_p5, %p1030_p4 }
  0x4c   :  { %1038 = shalt.err (!%p1035_p6)
}
  0x4d   :  { %s1039_s26 = scalar_lea.vmem %s51_s1, 512  ;;  %p1044_p8 = scmp.lt.s32.totalorder %s51_s1, %s51_s1 }
  0x4e   :  { %p1040_p7 = scmp.ne.s32.totalorder %s51_s1, %s1039_s26  ;;  %p1045_p9 = scmp.lt.s32.totalorder %s1039_s26, %s1039_s26 }
  0x50   :  { %p1046_p10 = por %p1045_p9, %p1044_p8 }
  0x52   :  { %p1047_p11 = pnand %p1046_p10, %p1040_p7 }
  0x54   :  { %1050 = shalt.err (!%p1047_p11)
}
  0x55   :  { %56 = dma.hbm_to_vmem [thread:$0]  %s1338_s2, 512, %s51_s1, [#allocation6], %s1132_s18, %s1132_s18, %s1133_s24  }
  0x56   :  { %s1136_s29 = smov [#allocation10]   ;;  %s1137_s12 = smov [#allocation13]  }
  0x57   :  { %s76_s30 = sshll.u32 %s1136_s29, 4  ;;  %s104_s14 = sshll.u32 %s1137_s12, 4  ;;  %s77_s30 = int_to_ptr.vmem [resolvable:$true] %s76_s30  ;;  %s105_s14 = int_to_ptr.vmem [resolvable:$true] %s104_s14 }
  0x58   :  { %s1051_s15 = scalar_lea.hbm %s1341_s5, 4096 }
  0x59   :  { %p1052_p12 = scmp.ne.s32.totalorder %s1341_s5, %s1051_s15  ;;  %p1055_p13 = scmp.lt.u32.totalorder %s1051_s15, %s1341_s5 }
  0x5b   :  { %p1057_p0 = pnand %p1055_p13, %p1052_p12 }
  0x5d   :  { %1060 = shalt.err (!%p1057_p0)
}
  0x5e   :  { %s1061_s2 = scalar_lea.vmem %s77_s30, 4096  ;;  %p1066_p2 = scmp.lt.s32.totalorder %s77_s30, %s77_s30 }
  0x5f   :  { %p1062_p1 = scmp.ne.s32.totalorder %s77_s30, %s1061_s2  ;;  %p1067_p3 = scmp.lt.s32.totalorder %s1061_s2, %s1061_s2 }
  0x61   :  { %p1068_p4 = por %p1067_p3, %p1066_p2 }
  0x63   :  { %p1069_p5 = pnand %p1068_p4, %p1062_p1 }
  0x65   :  { %1072 = shalt.err (!%p1069_p5)
}
  0x66   :  { %82 = dma.hbm_to_vmem [thread:$0]  %s1341_s5, 4096, %s77_s30, [#allocation9], %s1128_s27, %s1128_s27, %s1129_s28  }
  0x67   :  { %s1073_s21 = scalar_lea.hbm %s1345_s9, 2048 }
  0x68   :  { %p1074_p6 = scmp.ne.s32.totalorder %s1345_s9, %s1073_s21  ;;  %p1077_p7 = scmp.lt.u32.totalorder %s1073_s21, %s1345_s9 }
  0x6a   :  { %p1079_p8 = pnand %p1077_p7, %p1074_p6 }
  0x6c   :  { %1082 = shalt.err (!%p1079_p8)
}
  0x6d   :  { %s1083_s22 = scalar_lea.vmem %s105_s14, 2048  ;;  %p1088_p10 = scmp.lt.s32.totalorder %s105_s14, %s105_s14 }
  0x6e   :  { %p1084_p9 = scmp.ne.s32.totalorder %s105_s14, %s1083_s22  ;;  %p1089_p11 = scmp.lt.s32.totalorder %s1083_s22, %s1083_s22 }
  0x70   :  { %p1090_p12 = por %p1089_p11, %p1088_p10 }
  0x72   :  { %p1091_p13 = pnand %p1090_p12, %p1084_p9 }
  0x74   :  { %1094 = shalt.err (!%p1091_p13)
}
  0x75   :  { %110 = dma.hbm_to_vmem [thread:$0]  %s1345_s9, 2048, %s105_s14, [#allocation12], %s1128_s27, %s1128_s27, %s1129_s28  }
  0x76   :  { %1117 = dma.done.wait [#allocation3], 256  }
  0x77   :  { %1118 = vsyncadd [#allocation3], 4294967040 }
  0x78   :  { %1119 = dma.done.wait [#allocation6], 768  }
  0x79   :  { %1120 = vsyncadd [#allocation6], 4294966528 }
  0x7a   :  { %1121 = dma.done.wait [#allocation9], 4608  }
  0x7b   :  { %1122 = vsyncadd [#allocation9], 4294962688 }
  0x7c   :  { %1123 = dma.done.wait [#allocation12], 4096  }
  0x7d   :  { %1124 = vsyncadd [#allocation12], 4294963200  ;;  %v1138_v0 = vmov 0.0   ;;  %v143_v1 = vld [vmem:[#allocation8 + $0x8] sm:$0xff]  ;;  %v145_v2 = vld [vmem:[#allocation8 + $0x18] sm:$0xff]  ;;  %vm146_vm0 = vcmask 130048  }
  0x7e   :  { %217 = vmatprep.mubr.f32.mxu0 %v1138_v0  ;;  %v142_v3 = vld [vmem:[#allocation8] sm:$0xff]  ;;  %v820_v4 = vpack.c.bf16 %v145_v2, %v143_v1  ;;  %v144_v5 = vld [vmem:[#allocation8 + $0x10] sm:$0xff]  ;;  %v137_v6 = vld [vmem:[#allocation7 + $0x8] sm:$0xff]  ;;  %s1139_s15 = smov [#allocation14]  }
  0x7f   :  { %v822_v7 = vpack.c.bf16 %v144_v5, %v142_v3  ;;  %v139_v8 = vld [vmem:[#allocation7 + $0x18] sm:$0xff]  ;;  %v136_v9 = vld [vmem:[#allocation7] sm:$0xff]  ;;  %v138_v10 = vld [vmem:[#allocation7 + $0x10] sm:$0xff]  ;;  %s654_s17 = sshll.u32 %s1139_s15, 4  ;;  %s655_s17 = int_to_ptr.vmem [resolvable:$true] %s654_s17 }
  0x80   :  { %821 = vmatprep.subr.bf16.mxu0 %v820_v4  ;;  %v140_v11 = vld [vmem:[#allocation5] sm:$0xff]  ;;  %v824_v12 = vpack.c.bf16 %v139_v8, %v137_v6  ;;  %v826_v13 = vpack.c.bf16 %v138_v10, %v136_v9  ;;  %v349_v14 = vld [vmem:[#allocation10 + $0x80] sm:$0xff]  ;;  %v350_v15 = vld [vmem:[#allocation10 + $0x88] sm:$0xff]  ;;  %p1100_p1 = scmp.lt.s32.totalorder %s655_s17, %s655_s17 }
  0x81   :  { %823 = vmatpush1.bf16.msra.mxu0 %v822_v7  ;;  %v333_v16 = vld [vmem:[#allocation10] sm:$0xff]  ;;  %v828_v17 = vpack.c.bf16 %v350_v15, %v349_v14  ;;  %v334_v18 = vld [vmem:[#allocation10 + $0x8] sm:$0xff]  ;;  %v351_v19 = vld [vmem:[#allocation10 + $0x90] sm:$0xff] }
  0x82   :  { %825 = vmatprep.subr.bf16.mxu0 %v824_v12  ;;  %v352_v20 = vld [vmem:[#allocation10 + $0x98] sm:$0xff]  ;;  %v830_v21 = vpack.c.bf16 %v334_v18, %v333_v16  ;;  %v335_v23 = vld [vmem:[#allocation10 + $0x10] sm:$0xff]  ;;  %v353_v25 = vld [vmem:[#allocation10 + $0xa0] sm:$0xff]  ;;  %v315_v16 = vlaneseq }
  0x83   :  { %v832_v22 = vpack.c.bf16 %v352_v20, %v351_v19  ;;  %v336_v24 = vld [vmem:[#allocation10 + $0x18] sm:$0xff]  ;;  %829 = vmatprep.subr.bf16.mxu1 %v828_v17  ;;  %v354_v26 = vld [vmem:[#allocation10 + $0xa8] sm:$0xff]  ;;  %v337_v30 = vld [vmem:[#allocation10 + $0x20] sm:$0xff] }
  0x84   :  { %669 = vmatmul.mubr.msk.f32.vlgmr.msra.gmra.mrb[0].mxu0 %vm146_vm0, %v140_v11  ;;  %v141_v27 = vld [vmem:[#allocation5 + $0x8] sm:$0xff]  ;;  %831 = vmatpush3.bf16.msra.mxu1 %v830_v21  ;;  %v834_v28 = vpack.c.bf16 %v336_v24, %v335_v23  ;;  %v836_v29 = vpack.c.bf16 %v354_v26, %v353_v25  ;;  %v338_v31 = vld [vmem:[#allocation10 + $0x28] sm:$0xff]  ;;  %v355_v32 = vld [vmem:[#allocation10 + $0xb0] sm:$0xff]  ;;  %v316_v17 = vshrl.u32 %v315_v16, 7 }
  0x85   :  { %827 = vmatpush1.bf16.msra.mxu0 %v826_v13  ;;  %223 = vmatprep.mubr.f32.mxu0 %v1138_v0  ;;  %v356_v33 = vld [vmem:[#allocation10 + $0xb8] sm:$0xff]  ;;  %v134_v34 = vld [vmem:[#allocation2] sm:$0xff]  ;;  %v838_v35 = vpack.c.bf16 %v338_v31, %v337_v30  ;;  %v339_v37 = vld [vmem:[#allocation10 + $0x30] sm:$0xff] }
  0x86   :  { %833 = vmatprep.subr.bf16.mxu1 %v832_v22  ;;  %v840_v36 = vpack.c.bf16 %v356_v33, %v355_v32  ;;  %v340_v38 = vld [vmem:[#allocation10 + $0x38] sm:$0xff]  ;;  %v357_v39 = vld [vmem:[#allocation10 + $0xc0] sm:$0xff]  ;;  %v358_v40 = vld [vmem:[#allocation10 + $0xc8] sm:$0xff]  ;;  %v317_v18 = vsub.s32 0, %v316_v17  ;;  %v321_v20 = vsub.s32 1, %v316_v17 }
  0x87   :  { %v135_v41 = vld [vmem:[#allocation2 + $0x8] sm:$0xff]  ;;  %v842_v42 = vpack.c.bf16 %v340_v38, %v339_v37  ;;  %v844_v43 = vpack.c.bf16 %v358_v40, %v357_v39  ;;  %v341_v44 = vld [vmem:[#allocation10 + $0x40] sm:$0xff]  ;;  %v359_v46 = vld [vmem:[#allocation10 + $0xd0] sm:$0xff] }
  0x88   :  { %670 = vmatmul.mubr.msk.f32.gmra.mrb[2].mxu0 %vm146_vm0, %v141_v27  ;;  %835 = vmatpush3.bf16.msra.mxu1 %v834_v28  ;;  %v342_v45 = vld [vmem:[#allocation10 + $0x48] sm:$0xff]  ;;  %v360_v47 = vld [vmem:[#allocation10 + $0xd8] sm:$0xff]  ;;  %v343_v50 = vld [vmem:[#allocation10 + $0x50] sm:$0xff] }
  0x89   :  { %300 = vmatprep.mubr.f32.mxu0 %v1138_v0  ;;  %837 = vmatprep.subr.bf16.mxu1 %v836_v29  ;;  %v846_v48 = vpack.c.bf16 %v342_v45, %v341_v44  ;;  %v848_v49 = vpack.c.bf16 %v360_v47, %v359_v46  ;;  %v344_v51 = vld [vmem:[#allocation10 + $0x58] sm:$0xff]  ;;  %v361_v52 = vld [vmem:[#allocation10 + $0xe0] sm:$0xff]  ;;  %v362_v53 = vld [vmem:[#allocation10 + $0xe8] sm:$0xff] }
  0x8a   :  { %v850_v54 = vpack.c.bf16 %v344_v51, %v343_v50  ;;  %v852_v55 = vpack.c.bf16 %v362_v53, %v361_v52  ;;  %v345_v56 = vld [vmem:[#allocation10 + $0x60] sm:$0xff]  ;;  %v346_v57 = vld [vmem:[#allocation10 + $0x68] sm:$0xff]  ;;  %v363_v59 = vld [vmem:[#allocation10 + $0xf0] sm:$0xff] }
  0x8b   :  { %v854_v58 = vpack.c.bf16 %v346_v57, %v345_v56  ;;  %v364_v60 = vld [vmem:[#allocation10 + $0xf8] sm:$0xff]  ;;  %v347_v62 = vld [vmem:[#allocation10 + $0x70] sm:$0xff]  ;;  %v449_v1 = vld [vmem:[#allocation11] sm:$0xff] }
  0x8c   :  { %671 = vmatmul.mubr.msk.f32.vlgmr.msra.gmra.mrb[0].mxu0 %vm146_vm0, %v134_v34  ;;  %839 = vmatpush3.bf16.msra.mxu1 %v838_v35  ;;  %v856_v61 = vpack.c.bf16 %v364_v60, %v363_v59  ;;  %v348_v63 = vld [vmem:[#allocation10 + $0x78] sm:$0xff]  ;;  %v450_v2 = vld [vmem:[#allocation11 + $0x8] sm:$0xff]  ;;  %v451_v3 = vld [vmem:[#allocation11 + $0x10] sm:$0xff] }
  0x8d   :  { %306 = vmatprep.mubr.f32.mxu0 %v1138_v0  ;;  %841 = vmatprep.subr.bf16.mxu1 %v840_v36  ;;  %v858_v0 = vpack.c.bf16 %v348_v63, %v347_v62  ;;  %v860_v4 = vpack.c.bf16 %v450_v2, %v449_v1  ;;  %v452_v5 = vld [vmem:[#allocation11 + $0x18] sm:$0xff]  ;;  %v453_v7 = vld [vmem:[#allocation11 + $0x20] sm:$0xff]  ;;  %v454_v8 = vld [vmem:[#allocation11 + $0x28] sm:$0xff] }
  0x8e   :  { %v864_v6 = vpack.c.bf16 %v452_v5, %v451_v3  ;;  %v868_v9 = vpack.c.bf16 %v454_v8, %v453_v7  ;;  %v455_v10 = vld [vmem:[#allocation11 + $0x30] sm:$0xff]  ;;  %v456_v11 = vld [vmem:[#allocation11 + $0x38] sm:$0xff]  ;;  %v457_v13 = vld [vmem:[#allocation11 + $0x40] sm:$0xff] }
  0x8f   :  { %861 = vmatprep.subr.bf16.mxu0 %v860_v4  ;;  %v872_v12 = vpack.c.bf16 %v456_v11, %v455_v10  ;;  %v458_v14 = vld [vmem:[#allocation11 + $0x48] sm:$0xff]  ;;  %v313_v19 = vld [vmem:[%s1340_s4] sm:$0x3]  ;;  %v459_v35 = vld [vmem:[#allocation11 + $0x50] sm:$0xff] }
  0x90   :  { %672 = vmatmul.mubr.msk.f32.gmra.mrb[2].mxu0 %vm146_vm0, %v135_v41  ;;  %843 = vmatpush3.bf16.msra.mxu1 %v842_v42  ;;  %v876_v15 = vpack.c.bf16 %v458_v14, %v457_v13  ;;  %v318_v21 = vrot.slane %v313_v19, %v317_v18  ;;  %v322_v22 = vrot.slane %v313_v19, %v321_v20  ;;  %v460_v36 = vld [vmem:[#allocation11 + $0x58] sm:$0xff]  ;;  %v461_v38 = vld [vmem:[#allocation11 + $0x60] sm:$0xff]  ;;  %v462_v39 = vld [vmem:[#allocation11 + $0x68] sm:$0xff] }
  0x91   :  { %845 = vmatprep.subr.bf16.mxu1 %v844_v43  ;;  %863 = vmatpush3.bf16.msra.mxu0 %v860_v4  ;;  %v880_v37 = vpack.c.bf16 %v460_v36, %v459_v35  ;;  %v884_v40 = vpack.c.bf16 %v462_v39, %v461_v38  ;;  %v463_v41 = vld [vmem:[#allocation11 + $0x70] sm:$0xff]  ;;  %v464_v42 = vld [vmem:[#allocation11 + $0x78] sm:$0xff]  ;;  %v549_v44 = vld [vmem:[#allocation13] sm:$0xff] }
  0x92   :  { %865 = vmatprep.subr.bf16.mxu0 %v864_v6  ;;  %v888_v43 = vpack.c.bf16 %v464_v42, %v463_v41  ;;  %v550_v45 = vld [vmem:[#allocation13 + $0x8] sm:$0xff]  ;;  %v551_v46 = vld [vmem:[#allocation13 + $0x10] sm:$0xff]  ;;  %v553_v50 = vld [vmem:[#allocation13 + $0x20] sm:$0xff] }
  0x93   :  { %v892_v47 = vpack.c.bf16 %v550_v45, %v549_v44  ;;  %v554_v51 = vld [vmem:[#allocation13 + $0x28] sm:$0xff]  ;;  %v555_v53 = vld [vmem:[#allocation13 + $0x30] sm:$0xff]  ;;  %v557_v56 = vld [vmem:[#allocation13 + $0x40] sm:$0xff] }
  0x94   :  { %847 = vmatpush3.bf16.msra.mxu1 %v846_v48  ;;  %v552_v48 = vld [vmem:[#allocation13 + $0x18] sm:$0xff]  ;;  %v900_v52 = vpack.c.bf16 %v554_v51, %v553_v50  ;;  %v558_v57 = vld [vmem:[#allocation13 + $0x48] sm:$0xff]  ;;  %v559_v59 = vld [vmem:[#allocation13 + $0x50] sm:$0xff] }
  0x95   :  { %849 = vmatprep.subr.bf16.mxu1 %v848_v49  ;;  %867 = vmatpush3.bf16.msra.mxu0 %v864_v6  ;;  %v896_v49 = vpack.c.bf16 %v552_v48, %v551_v46  ;;  %v560_v60 = vld [vmem:[#allocation13 + $0x58] sm:$0xff]  ;;  %v561_v62 = vld [vmem:[#allocation13 + $0x60] sm:$0xff]  ;;  %v562_v63 = vld [vmem:[#allocation13 + $0x68] sm:$0xff] }
  0x96   :  { %869 = vmatprep.subr.bf16.mxu0 %v868_v9  ;;  %v673_v2 = vld [vmem:[%s1342_s6] ss:$0 sm:$0xff]  ;;  %v564_v13 = vld [vmem:[#allocation13 + $0x78] sm:$0xff] }
  0x98   :  { %851 = vmatpush3.bf16.msra.mxu1 %v850_v54  ;;  %v556_v54 = vld [vmem:[#allocation13 + $0x38] sm:$0xff] }
  0x99   :  { %853 = vmatprep.subr.bf16.mxu1 %v852_v55  ;;  %871 = vmatpush3.bf16.msra.mxu0 %v868_v9  ;;  %v904_v55 = vpack.c.bf16 %v556_v54, %v555_v53 }
  0x9a   :  { %873 = vmatprep.subr.bf16.mxu0 %v872_v12 }
  0x9c   :  { %855 = vmatpush3.bf16.msra.mxu1 %v854_v58  ;;  %v908_v58 = vpack.c.bf16 %v558_v57, %v557_v56 }
  0x9d   :  { %857 = vmatprep.subr.bf16.mxu1 %v856_v61  ;;  %875 = vmatpush3.bf16.msra.mxu0 %v872_v12  ;;  %v912_v61 = vpack.c.bf16 %v560_v60, %v559_v59  ;;  %v563_v12 = vld [vmem:[#allocation13 + $0x70] sm:$0xff] }
  0x9e   :  { %877 = vmatprep.subr.bf16.mxu0 %v876_v15  ;;  %v920_v14 = vpack.c.bf16 %v564_v13, %v563_v12 }
  0xa0   :  { %859 = vmatpush3.bf16.msra.mxu1 %v858_v0  ;;  %v916_v0 = vpack.c.bf16 %v562_v63, %v561_v62 }
  0xa1   :  { %879 = vmatpush3.bf16.msra.mxu0 %v876_v15  ;;  %893 = vmatprep.subr.bf16.mxu1 %v892_v47  ;;  %v674_v15 = vld [vmem:[%s1344_s8] ss:$0 sm:$0xff]  ;;  %s1095_s8 = scalar_lea.vmem %s655_s17, 256 }
  0xa2   :  { %881 = vmatprep.subr.bf16.mxu0 %v880_v37  ;;  %p1096_p0 = scmp.ne.s32.totalorder %s655_s17, %s1095_s8  ;;  %p1101_p2 = scmp.lt.s32.totalorder %s1095_s8, %s1095_s8 }
  0xa4   :  { %p1102_p3 = por %p1101_p2, %p1100_p1 }
  0xa5   :  { %883 = vmatpush3.bf16.msra.mxu0 %v880_v37 }
  0xa6   :  { %885 = vmatprep.subr.bf16.mxu0 %v884_v40  ;;  %p1103_p4 = pnand %p1102_p3, %p1096_p0 }
  0xa9   :  { %887 = vmatpush3.bf16.msra.mxu0 %v884_v40 }
  0xaa   :  { %889 = vmatprep.subr.bf16.mxu0 %v888_v43 }
  0xad   :  { %891 = vmatpush3.bf16.msra.mxu0 %v888_v43 }
 0x15f   :  { %v302_v23 = vpop.f32.mrb[0].mxu0 }
 0x160   :  { %v325_v24 = vadd.f32 %v318_v21, %v302_v23  ;;  %v304_v25 = vpop.f32.mrb[1].mxu0 }
 0x161   :  { %v326_v26 = vadd.f32 %v322_v22, %v304_v25 }
 0x162   :  { %v329_v29 = vmax.f32 %v325_v24, 0.0 }
 0x163   :  { %v308_v27 = vpop.f32.mrb[2].mxu0  ;;  %v330_v28 = vmax.f32 %v326_v26, 0.0 }
 0x164   :  { %v327_v30 = vadd.f32 %v318_v21, %v308_v27  ;;  %v310_v31 = vpop.f32.mrb[3].mxu0 }
 0x165   :  { %v328_v32 = vadd.f32 %v322_v22, %v310_v31  ;;  %436 = vmatprep.mubr.f32.mxu1 %v330_v28  ;;  %v675_v22 = vld [vmem:[%s1346_s10] ss:$0 sm:$0xff] }
 0x166   :  { %437 = vmatmul.mubr.f32.vlgmr.msra.gmra.mrb[0].mxu1 %v329_v29  ;;  %v331_v34 = vmax.f32 %v327_v30, 0.0 }
 0x167   :  { %v332_v33 = vmax.f32 %v328_v32, 0.0  ;;  %895 = vmatpush3.bf16.msra.mxu1 %v892_v47 }
 0x168   :  { %897 = vmatprep.subr.bf16.mxu1 %v896_v49 }
 0x169   :  { %441 = vmatprep.mubr.f32.mxu1 %v332_v33 }
 0x16a   :  { %442 = vmatmul.mubr.f32.gmra.mrb[2].mxu1 %v331_v34 }
 0x16b   :  { %899 = vmatpush3.bf16.msra.mxu1 %v896_v49 }
 0x16c   :  { %901 = vmatprep.subr.bf16.mxu1 %v900_v52 }
 0x16f   :  { %903 = vmatpush3.bf16.msra.mxu1 %v900_v52 }
 0x170   :  { %905 = vmatprep.subr.bf16.mxu1 %v904_v55 }
 0x173   :  { %907 = vmatpush3.bf16.msra.mxu1 %v904_v55 }
 0x174   :  { %909 = vmatprep.subr.bf16.mxu1 %v908_v58 }
 0x177   :  { %911 = vmatpush3.bf16.msra.mxu1 %v908_v58 }
 0x178   :  { %913 = vmatprep.subr.bf16.mxu1 %v912_v61 }
 0x17b   :  { %915 = vmatpush3.bf16.msra.mxu1 %v912_v61 }
 0x17c   :  { %917 = vmatprep.subr.bf16.mxu1 %v916_v0 }
 0x17f   :  { %919 = vmatpush3.bf16.msra.mxu1 %v916_v0 }
 0x180   :  { %921 = vmatprep.subr.bf16.mxu1 %v920_v14 }
 0x183   :  { %923 = vmatpush3.bf16.msra.mxu1 %v920_v14 }
 0x239   :  { %v708_v1 = vpop.f32.mrb[0].mxu1 }
 0x23a   :  { %v709_v3 = vpop.f32.mrb[1].mxu1 }
 0x23b   :  { %v710_v4 = vadd.f32 %v709_v3, %v708_v1 }
 0x23d   :  { %v439_v5 = vadd.f32 %v710_v4, %v673_v2  ;;  %v711_v6 = vpop.f32.mrb[2].mxu1 }
 0x23e   :  { %v712_v7 = vpop.f32.mrb[3].mxu1 }
 0x23f   :  { %v447_v8 = vmax.f32 %v439_v5, 0.0  ;;  %v713_v9 = vadd.f32 %v712_v7, %v711_v6 }
 0x241   :  { %v444_v10 = vadd.f32 %v713_v9, %v673_v2  ;;  %782 = vmatprep.mubr.f32.mxu0 %v447_v8 }
 0x243   :  { %v448_v11 = vmax.f32 %v444_v10, 0.0 }
 0x245   :  { %783 = vmatmul.mubr.f32.vlgmr.msra.gmra.mrb[4].mxu0 %v448_v11 }
 0x318   :  { %v784_v16 = vpop.f32.mrb[4].mxu0 }
 0x319   :  { %v544_v17 = vadd.f32 %v784_v16, %v674_v15  ;;  %v538_v18 = vpop.f32.mrb[5].mxu0 }
 0x31a   :  { %v539_v19 = vadd.f32 %v674_v15, %v538_v18 }
 0x31b   :  { %v548_v21 = vmax.f32 %v544_v17, 0.0 }
 0x31c   :  { %v547_v20 = vmax.f32 %v539_v19, 0.0 }
 0x31e   :  { %817 = vmatprep.mubr.f32.mxu1 %v547_v20 }
 0x31f   :  { %818 = vmatmul.mubr.f32.vlgmr.msra.gmra.mrb[4].mxu1 %v548_v21 }
 0x3f2   :  { %v819_v23 = vpop.f32.mrb[4].mxu1 }
 0x3f3   :  { %v644_v24 = vadd.f32 %v819_v23, %v675_v22  ;;  %v638_v25 = vpop.f32.mrb[5].mxu1 }
 0x3f4   :  { %v639_v26 = vadd.f32 %v675_v22, %v638_v25 }
 0x3f5   :  { %648 = vst [vmem:[#allocation14 + $0x8] sm:$0xff] %v644_v24 }
 0x3f6   :  { %647 = vst [vmem:[#allocation14] sm:$0xff] %v639_v26 }
 0x3f7   :  { %1106 = shalt.err (!%p1103_p4)
}
 0x3f8   :  { %s1107_s10 = scalar_lea.hbm %s1347_s11, 256 }
 0x3f9   :  { %p1108_p5 = scmp.ne.s32.totalorder %s1347_s11, %s1107_s10  ;;  %p1111_p6 = scmp.lt.u32.totalorder %s1107_s10, %s1347_s11 }
 0x3fb   :  { %p1113_p7 = pnand %p1111_p6, %p1108_p5 }
 0x3fd   :  { %1116 = shalt.err (!%p1113_p7)
}
 0x3fe   :  { %660 = dma.vmem_to_hbm [thread:$0]  %s655_s17, 256, %s1347_s11, [#allocation4], %s1128_s27, %s1128_s27, %s1129_s28  }
 0x3ff   :  { %1125 = dma.done.wait [#allocation4], 256  }
 0x400   :  { %1126 = vsyncadd [#allocation4], 4294967040 }
 0x401   :  { %664 = vsyncpa [#allocation3], 1 }
 0x402   :  { %665 = vsyncpa [#allocation6], 1 }
 0x403   :  { %666 = vsyncpa [#allocation9], 1 }
 0x404   :  { %667 = vsyncpa [#allocation12], 1 }
 0x405   :  { %668 = vsyncpa [#allocation4], 1 }

</bundles_post_ra>
